<compile_context>
chip_gen: v6e
topology: v6e:2x2x1
jax: 0.10.0
libtpu: 0.0.40
codegen_flags: <defaults>
</compile_context>

<pallas_src>
import functools

import jax
import jax.numpy as jnp
from jax.experimental import pallas as pl
from jax.experimental.pallas import tpu as pltpu

_LANE = 128


def _round_up(n, m):
    return ((n + m - 1) // m) * m


def _mlp_kernel(x_ref, w1_ref, b1_ref, w2_ref, b2_ref, o_ref):
    # Layer 1: (TB, in) @ (in, hid) on the MXU, f32 accumulation.
    h = jnp.dot(x_ref[...], w1_ref[...], preferred_element_type=jnp.float32)
    h = jnp.maximum(h + b1_ref[...], 0.0)          # bias + ReLU in f32 (VPU)
    # Dropout: eval-mode identity.
    # TODO(synk): training-mode dropout would need pltpu.prng_seed/prng_random_bits in-kernel.
    out = jnp.dot(h.astype(w2_ref.dtype), w2_ref[...],
                  preferred_element_type=jnp.float32)
    o_ref[...] = (out + b2_ref[...]).astype(o_ref.dtype)   # lane-dense (TB, 128) store


def prepare_params(params, compute_dtype=jnp.bfloat16):
    """One-time weight prep (hoisted out of the per-call path).

    weight_norm(dim=None): W = g * v / ||v||_F (scalar g, Frobenius norm).
    Effective weights are materialized once, transposed to [K, N], cast to the
    MXU input dtype, and layer 2 is zero-padded to a 128-lane-dense output slab.
    """
    v1, g1, b1 = params["v1"], params["g1"], params["b1"]
    v2, g2, b2 = params["v2"], params["g2"], params["b2"]
    w1 = (g1 * v1 / jnp.linalg.norm(v1)).T          # [in_dim, hid_dim]
    w2 = (g2 * v2 / jnp.linalg.norm(v2)).T          # [hid_dim, out_dim]
    hid_dim = w1.shape[1]
    out_dim = w2.shape[1]
    out_pad = _round_up(out_dim, _LANE)
    w2p = jnp.zeros((hid_dim, out_pad), jnp.float32).at[:, :out_dim].set(w2)
    b2p = jnp.zeros((1, out_pad), jnp.float32).at[0, :out_dim].set(b2)
    prep = {
        "w1": w1.astype(compute_dtype),             # bf16 MXU input
        "b1": b1.reshape(1, hid_dim).astype(jnp.float32),
        "w2": w2p.astype(compute_dtype),            # bf16, lane-padded
        "b2": b2p,                                  # f32, lane-padded
    }
    return jax.device_put(prep), out_dim            # cached on device, reused per call


@functools.partial(jax.jit, static_argnames=("out_dim", "block_b"))
def simple_classifier_forward(x, w1, b1, w2, b2, *, out_dim, block_b=256):
    """Fused forward: ReLU(x @ W1 + b1) @ W2 + b2 (dropout = identity)."""
    B, in_dim = x.shape
    hid_dim = w1.shape[1]
    out_pad = w2.shape[1]

    # Batch tile: multiple of 8 sublanes, capped by block_b so double-buffered
    # x/out tiles + resident weights stay well inside v7x's 64 MiB VMEM.
    tb = min(block_b, _round_up(B, 8))
    b_pad = _round_up(B, tb)
    if b_pad != B:
        x = jnp.pad(x, ((0, b_pad - B), (0, 0)))
    x = x.astype(w1.dtype)                          # bf16 input -> half the DMA bytes

    out = pl.pallas_call(
        _mlp_kernel,
        out_shape=jax.ShapeDtypeStruct((b_pad, out_pad), jnp.float32),
        grid=(b_pad // tb,),
        in_specs=[
            pl.BlockSpec((tb, in_dim), lambda i: (i, 0)),        # x: pipelined per batch tile
            pl.BlockSpec((in_dim, hid_dim), lambda i: (0, 0)),   # w1: VMEM-resident
            pl.BlockSpec((1, hid_dim), lambda i: (0, 0)),        # b1: VMEM-resident
            pl.BlockSpec((hid_dim, out_pad), lambda i: (0, 0)),  # w2: VMEM-resident (lane-padded)
            pl.BlockSpec((1, out_pad), lambda i: (0, 0)),        # b2: VMEM-resident
        ],
        out_specs=pl.BlockSpec((tb, out_pad), lambda i: (i, 0)),
        compiler_params=pltpu.CompilerParams(
            dimension_semantics=("parallel",),      # shard batch tiles across v7x's 2 TCs
        ),
    )(x, w1, b1, w2, b2)

    return out[:B, :out_dim]


def init_params(key, in_dim, hid_dim, out_dim):
    k1, k2, k3, k4 = jax.random.split(key, 4)
    # v: underlying direction tensors (torch Linear weight shape: [out_feat, in_feat])
    v1 = jax.random.normal(k1, (hid_dim, in_dim), jnp.float32) * 0.1
    v2 = jax.random.normal(k2, (out_dim, hid_dim), jnp.float32) * 0.1
    # g: scalar magnitude (weight_norm dim=None); torch init: g = ||v||_F
    g1 = jnp.linalg.norm(v1)
    g2 = jnp.linalg.norm(v2)
    b1 = jax.random.normal(k3, (hid_dim,), jnp.float32) * 0.01
    b2 = jax.random.normal(k4, (out_dim,), jnp.float32) * 0.01
    return {"v1": v1, "g1": g1, "b1": b1, "v2": v2, "g2": g2, "b2": b2}


if __name__ == "__main__":
    in_dim, hid_dim, out_dim = 32, 64, 16
    batch = 8

    key = jax.random.PRNGKey(0)
    kx, kp = jax.random.split(key)
    x = jax.random.normal(kx, (batch, in_dim), jnp.float32)
    params = init_params(kp, in_dim, hid_dim, out_dim)

    # One-time weight prep (hoisted weight_norm + transpose + padding + bf16 cast).
    prep, odim = prepare_params(params)

    logits = simple_classifier_forward(
        x, prep["w1"], prep["b1"], prep["w2"], prep["b2"],
        out_dim=odim, block_b=256)
    jax.block_until_ready(logits)

    # Pure-JAX reference with identical math (bf16 MXU inputs, f32 accumulation).
    w1f = (params["g1"] * params["v1"] / jnp.linalg.norm(params["v1"])).T
    w2f = (params["g2"] * params["v2"] / jnp.linalg.norm(params["v2"])).T
    xb = x.astype(jnp.bfloat16)
    h_ref = jnp.maximum(
        jnp.dot(xb, w1f.astype(jnp.bfloat16), preferred_element_type=jnp.float32)
        + params["b1"], 0.0)
    ref = jnp.dot(h_ref.astype(jnp.bfloat16), w2f.astype(jnp.bfloat16),
                  preferred_element_type=jnp.float32) + params["b2"]

    assert logits.shape == (batch, out_dim)
    assert jnp.allclose(logits, ref, atol=1e-3, rtol=1e-3), \
        float(jnp.max(jnp.abs(logits - ref)))

    print("KERNEL_OK")
</pallas_src>

<mosaic_0001>
module attributes {stable_mosaic.version = 11 : i64} {
  func.func @_mlp_kernel(%arg0: i32, %arg1: memref<8x32xbf16, #tpu.memory_space<vmem>>, %arg2: memref<32x64xbf16, #tpu.memory_space<vmem>>, %arg3: memref<1x64xf32, #tpu.memory_space<vmem>>, %arg4: memref<64x128xbf16, #tpu.memory_space<vmem>>, %arg5: memref<1x128xf32, #tpu.memory_space<vmem>>, %arg6: memref<8x128xf32, #tpu.memory_space<vmem>>) attributes {dimension_semantics = [#tpu.dimension_semantics<parallel>], iteration_bounds = array<i64: 1>, scalar_prefetch = 0 : i64, scratch_operands = 0 : i64, tpu.core_type = #tpu.core_type<tc>, window_params = [{transform_indices = @transform_0, window_bounds = array<i64: 8, 32>}, {pipeline_mode = #tpu.pipeline_mode<synchronous>, transform_indices = @transform_1, window_bounds = array<i64: 32, 64>}, {pipeline_mode = #tpu.pipeline_mode<synchronous>, transform_indices = @transform_2, window_bounds = array<i64: 1, 64>}, {pipeline_mode = #tpu.pipeline_mode<synchronous>, transform_indices = @transform_3, window_bounds = array<i64: 64, 128>}, {pipeline_mode = #tpu.pipeline_mode<synchronous>, transform_indices = @transform_4, window_bounds = array<i64: 1, 128>}, {transform_indices = @transform_5, window_bounds = array<i64: 8, 128>}]} {
    %c0 = arith.constant 0 : index
    %c0_0 = arith.constant 0 : index
    %0 = vector.load %arg1[%c0, %c0_0] : memref<8x32xbf16, #tpu.memory_space<vmem>>, vector<8x32xbf16>
    %c0_1 = arith.constant 0 : index
    %c0_2 = arith.constant 0 : index
    %1 = vector.load %arg2[%c0_1, %c0_2] : memref<32x64xbf16, #tpu.memory_space<vmem>>, vector<32x64xbf16>
    %cst = arith.constant dense<0.000000e+00> : vector<8x64xf32>
    %2 = tpu.matmul %0, %1, %cst {dimension_numbers = #tpu.dot_dimension_numbers<[1], [0], [0], [1], [0, 0, 1, 1], [], []>} : vector<8x32xbf16>, vector<32x64xbf16>, vector<8x64xf32> -> vector<8x64xf32>
    %c0_3 = arith.constant 0 : index
    %c0_4 = arith.constant 0 : index
    %3 = vector.load %arg3[%c0_3, %c0_4] : memref<1x64xf32, #tpu.memory_space<vmem>>, vector<1x64xf32>
    %4 = vector.broadcast %3 : vector<1x64xf32> to vector<8x64xf32>
    %5 = arith.addf %2, %4 : vector<8x64xf32>
    %cst_5 = arith.constant 0.000000e+00 : f32
    %6 = vector.broadcast %cst_5 : f32 to vector<8x64xf32>
    %7 = arith.maximumf %5, %6 : vector<8x64xf32>
    %8 = arith.truncf %7 : vector<8x64xf32> to vector<8x64xbf16>
    %c0_6 = arith.constant 0 : index
    %c0_7 = arith.constant 0 : index
    %9 = vector.load %arg4[%c0_6, %c0_7] : memref<64x128xbf16, #tpu.memory_space<vmem>>, vector<64x128xbf16>
    %cst_8 = arith.constant dense<0.000000e+00> : vector<8x128xf32>
    %10 = tpu.matmul %8, %9, %cst_8 {dimension_numbers = #tpu.dot_dimension_numbers<[1], [0], [0], [1], [0, 0, 1, 1], [], []>} : vector<8x64xbf16>, vector<64x128xbf16>, vector<8x128xf32> -> vector<8x128xf32>
    %c0_9 = arith.constant 0 : index
    %c0_10 = arith.constant 0 : index
    %11 = vector.load %arg5[%c0_9, %c0_10] : memref<1x128xf32, #tpu.memory_space<vmem>>, vector<1x128xf32>
    %12 = vector.broadcast %11 : vector<1x128xf32> to vector<8x128xf32>
    %13 = arith.addf %10, %12 : vector<8x128xf32>
    %c0_11 = arith.constant 0 : index
    %c0_12 = arith.constant 0 : index
    %14 = vector.load %arg6[%c0_11, %c0_12] : memref<8x128xf32, #tpu.memory_space<vmem>>, vector<8x128xf32>
    tpu.vector_store %arg6[%c0_11, %c0_12], %13 {strides = array<i32>} : memref<8x128xf32, #tpu.memory_space<vmem>>, vector<8x128xf32>,
    return
  }
  func.func @transform_0(%arg0: i32) -> (i32, i32) {
    %c0_i32 = arith.constant 0 : i32
    %c0_i32_0 = arith.constant 0 : i32
    return %arg0, %c0_i32 : i32, i32
  }
  func.func @transform_1(%arg0: i32) -> (i32, i32) {
    %c0_i32 = arith.constant 0 : i32
    %c0_i32_0 = arith.constant 0 : i32
    %c0_i32_1 = arith.constant 0 : i32
    return %c0_i32, %c0_i32_0 : i32, i32
  }
  func.func @transform_2(%arg0: i32) -> (i32, i32) {
    %c0_i32 = arith.constant 0 : i32
    %c0_i32_0 = arith.constant 0 : i32
    %c0_i32_1 = arith.constant 0 : i32
    return %c0_i32, %c0_i32_0 : i32, i32
  }
  func.func @transform_3(%arg0: i32) -> (i32, i32) {
    %c0_i32 = arith.constant 0 : i32
    %c0_i32_0 = arith.constant 0 : i32
    %c0_i32_1 = arith.constant 0 : i32
    return %c0_i32, %c0_i32_0 : i32, i32
  }
  func.func @transform_4(%arg0: i32) -> (i32, i32) {
    %c0_i32 = arith.constant 0 : i32
    %c0_i32_0 = arith.constant 0 : i32
    %c0_i32_1 = arith.constant 0 : i32
    return %c0_i32, %c0_i32_0 : i32, i32
  }
  func.func @transform_5(%arg0: i32) -> (i32, i32) {
    %c0_i32 = arith.constant 0 : i32
    %c0_i32_0 = arith.constant 0 : i32
    return %arg0, %c0_i32 : i32, i32
  }
}

</mosaic_0001>

<bundles_post_ra>
// kernel: simple_classifier_forward.1
= control target key start
LH: loop header
LB: loop body
LE: loop exit
PB: predicated region body
PF: predicated region fallthrough
CT: control target
= control target key end

     0   :  { %10 = vsyncpa [#allocation3], 0  ;;  %s392_s0 = inlined_call_operand.vmem [shape: bf16[8,32], index: 0, kind: input, shape index: {}]   ;;  %s393_s1 = inlined_call_operand.hbm [shape: bf16[32,64], index: 1, kind: input, shape index: {}]   ;;  %s394_s2 = inlined_call_operand.vmem [shape: f32[1,64], index: 2, kind: input, shape index: {}]   ;;  %s395_s3 = inlined_call_operand.hbm [shape: bf16[64,128], index: 3, kind: input, shape index: {}]   ;;  %s396_s4 = inlined_call_operand.vmem [shape: f32[1,128], index: 4, kind: input, shape index: {}]   ;;  %s397_s5 = inlined_call_operand.hbm [shape: f32[8,128], index: 5, kind: output, shape index: {}]  }
   0x1   :  { %11 = vsyncpa [#allocation6], 0 }
   0x2   :  { %12 = vsyncpa [#allocation4], 0  ;;  %s337_s18 = smov [#allocation2]  }
   0x3   :  { %s20_s19 = sshll.u32 %s337_s18, 4  ;;  %s21_s19 = int_to_ptr.vmem [resolvable:$true] %s20_s19 }
   0x4   :  { %s279_s20 = scalar_lea.vmem %s21_s19, 256  ;;  %p284_p1 = scmp.lt.s32.totalorder %s21_s19, %s21_s19 }
   0x5   :  { %p280_p0 = scmp.ne.s32.totalorder %s21_s19, %s279_s20  ;;  %p285_p2 = scmp.lt.s32.totalorder %s279_s20, %s279_s20 }
   0x7   :  { %p286_p3 = por %p285_p2, %p284_p1 }
   0x9   :  { %p287_p4 = pnand %p286_p3, %p280_p0 }
   0xb   :  { %290 = shalt.err (!%p287_p4)
}
   0xc   :  { %s338_s21 = smov 64   ;;  %s339_s22 = smov 4  }
   0xd   :  { %26 = dma.hbm_to_vmem [thread:$0]  %s393_s1, 256, %s21_s19, [#allocation3], %s338_s21, %s338_s21, %s339_s22  }
   0xe   :  { %s340_s25 = smov [#allocation5]  }
   0xf   :  { %s34_s26 = sshll.u32 %s340_s25, 4  ;;  %s35_s26 = int_to_ptr.vmem [resolvable:$true] %s34_s26 }
  0x10   :  { %s299_s27 = scalar_lea.vmem %s35_s26, 512  ;;  %p304_p6 = scmp.lt.s32.totalorder %s35_s26, %s35_s26 }
  0x11   :  { %p300_p5 = scmp.ne.s32.totalorder %s35_s26, %s299_s27  ;;  %p305_p7 = scmp.lt.s32.totalorder %s299_s27, %s299_s27 }
  0x13   :  { %p306_p8 = por %p305_p7, %p304_p6 }
  0x15   :  { %p307_p9 = pnand %p306_p8, %p300_p5 }
  0x17   :  { %310 = shalt.err (!%p307_p9)
}
  0x18   :  { %40 = dma.hbm_to_vmem [thread:$0]  %s395_s3, 512, %s35_s26, [#allocation6], %s338_s21, %s338_s21, %s339_s22  }
  0x19   :  { %331 = dma.done.wait [#allocation3], 256  }
  0x1a   :  { %332 = vsyncadd [#allocation3], 4294967040 }
  0x1b   :  { %333 = dma.done.wait [#allocation6], 512  }
  0x1c   :  { %334 = vsyncadd [#allocation6], 4294966784  ;;  %v341_v0 = vmov 0.0   ;;  %vm342_vm0 = vmmov 0   ;;  %v265_v1 = vld [vmem:[#allocation2 + $0x8] sm:$0xff]   ;;  %v266_v2 = vld [vmem:[#allocation2] sm:$0xff]  }
  0x1d   :  { %238 = vmatprep.subr.bf16.mxu0 %v341_v0  ;;  %242 = vmatprep.mubr.msk.bf16.mxu0 %vm342_vm0, %v341_v0  ;;  %v267_v3 = vld [vmem:[#allocation5 + $0x18] sm:$0xff]   ;;  %v268_v4 = vld [vmem:[#allocation5 + $0x10] sm:$0xff]   ;;  %vm74_vm1 = vcmask 261120   ;;  %v269_v6 = vld [vmem:[#allocation5 + $0x8] sm:$0xff]   ;;  %vm159_vm2 = vcmask 523264   ;;  %s343_s8 = smov [#allocation7]  }
  0x1e   :  { %246 = vmatprep.subr.bf16.mxu1 %v341_v0  ;;  %254 = vmatprep.mubr.msk.bf16.mxu1 %vm342_vm0, %v341_v0  ;;  %v50_v5 = vld [vmem:[%s392_s0] sm:$0xf]  ;;  %v270_v7 = vld [vmem:[#allocation5] sm:$0xff]   ;;  %s210_s9 = sshll.u32 %s343_s8, 4  ;;  %s211_s9 = int_to_ptr.vmem [resolvable:$true] %s210_s9 }
  0x1f   :  { %239 = vmatpush3.bf16.msra.mxu0 %v265_v1  ;;  %247 = vmatpush3.bf16.msra.mxu1 %v267_v3  ;;  %v220_v8 = vld [vmem:[%s394_s2] ss:$0 sm:$0xff]  ;;  %s311_s2 = scalar_lea.vmem %s211_s9, 128  ;;  %p316_p11 = scmp.lt.s32.totalorder %s211_s9, %s211_s9 }
  0x20   :  { %240 = vmatprep.subr.bf16.mxu0 %v341_v0  ;;  %248 = vmatprep.subr.bf16.mxu1 %v341_v0  ;;  %v224_v16 = vld [vmem:[%s396_s4] ss:$0 sm:$0xff]  ;;  %p312_p10 = scmp.ne.s32.totalorder %s211_s9, %s311_s2  ;;  %p317_p12 = scmp.lt.s32.totalorder %s311_s2, %s311_s2 }
  0x22   :  { %p318_p13 = por %p317_p12, %p316_p11 }
  0x23   :  { %241 = vmatpush3.bf16.msra.mxu0 %v266_v2  ;;  %249 = vmatpush3.bf16.msra.mxu1 %v268_v4 }
  0x24   :  { %250 = vmatprep.subr.bf16.mxu1 %v341_v0  ;;  %p319_p0 = pnand %p318_p13, %p312_p10 }
  0x26   :  { %243 = vmatmul.mubr.msk.bf16.vlgmr.msra.gmra.mxu0 %vm74_vm1, %v50_v5 }
  0x27   :  { %251 = vmatpush3.bf16.msra.mxu1 %v269_v6 }
  0x28   :  { %252 = vmatprep.subr.bf16.mxu1 %v341_v0 }
  0x2b   :  { %253 = vmatpush3.bf16.msra.mxu1 %v270_v7 }
  0xe6   :  { %v112_v9 = vpop.f32.mrf.mxu0 }
  0xe7   :  { %v113_v10 = vadd.f32 %v220_v8, %v112_v9 }
  0xe8   :  { %v244_v11 = vpop.f32.mrf.mxu0 }
  0xe9   :  { %v118_v12 = vmax.f32 %v113_v10, 0.0 }
  0xea   :  { %v115_v13 = vpop.f32.mrf.mxu0 }
  0xeb   :  { %v119_v14 = vpack.c.bf16 %v118_v12, %v118_v12 }
  0xec   :  { %v245_v15 = vpop.f32.mrf.mxu0 }
  0xed   :  { %255 = vmatmul.mubr.msk.bf16.vlgmr.msra.gmra.mxu1 %vm159_vm2, %v119_v14 }
 0x1ad   :  { %v197_v17 = vpop.f32.mrf.mxu1 }
 0x1ae   :  { %v198_v18 = vadd.f32 %v224_v16, %v197_v17 }
 0x1af   :  { %v256_v19 = vpop.f32.mrf.mxu1 }
 0x1b0   :  { %203 = vst [vmem:[#allocation7] sm:$0xff] %v198_v18 }
 0x1b1   :  { %v200_v20 = vpop.f32.mrf.mxu1 }
 0x1b2   :  { %322 = shalt.err (!%p319_p0)
}
 0x1b3   :  { %213 = dma.vmem_to_hbm [thread:$0]  %s211_s9, 128, %s397_s5, [#allocation4]   ;;  %v257_v21 = vpop.f32.mrf.mxu1 }
 0x1b4   :  { %335 = dma.done.wait [#allocation4], 128  }
 0x1b5   :  { %336 = vsyncadd [#allocation4], 4294967168 }
 0x1b6   :  { %217 = vsyncpa [#allocation3], 1 }
 0x1b7   :  { %218 = vsyncpa [#allocation6], 1 }
 0x1b8   :  { %219 = vsyncpa [#allocation4], 1 }

</bundles_post_ra>
